<compile_context>
chip_gen: v7x
topology: tpu7x:2x2x1
jax: 0.10.0
libtpu: 0.0.40
codegen_flags: <defaults>
</compile_context>

<pallas_src>
import jax
import jax.numpy as jnp
from jax.experimental import pallas as pl
from jax.experimental.pallas import tpu as pltpu


def _round_up(a, b):
    return (a + b - 1) // b * b


def _cdiv(a, b):
    return -(-a // b)


def _choose_tiling(N, D, num_parallel, vmem_budget_bytes):
    """Pick tile_n / grid so the working set fits the per-generation VMEM budget."""
    d_pad = _round_up(max(D, 1), 16)          # 16-sublane chunks (bf16 tile aligned)
    if vmem_budget_bytes is None:
        try:
            cap = int(pltpu.get_tpu_info().vmem_capacity_bytes)
        except Exception:
            cap = 64 << 20                    # conservative: v7x per-TensorCore VMEM
        vmem_budget_bytes = min(cap // 2, 64 << 20)

    # Bytes held in VMEM per lane of tile_n, simultaneously:
    per_lane = (2 * d_pad * 2      # x stream, bf16, double-buffered
                + 2 * 8 * 4        # c stream: (1, tile_n) sublane-padded to 8, 2 bufs
                + 2 * 8 * 4        # resident out slab, counted as 2 buffers
                + 16 * 4           # (16, tile_n) f32 chunk accumulator scratch
                + 2 * 16 * 4)      # chunk load / upcast temporaries (slack)
    fixed = 2 * d_pad * 128 * 4    # (D,1) weight is lane-padded to (D,128); 2 buffers

    avail = max(vmem_budget_bytes - fixed, per_lane * 128)
    tile_n_max = max(128, (avail // per_lane) // 128 * 128)
    tile_n_max = min(tile_n_max, 32768)       # lane-width gains saturate well below

    n_par = num_parallel if N > tile_n_max else 1
    tiles_per_par = max(1, _cdiv(N, n_par * tile_n_max))
    # Re-derive tile_n from N so padding is < 128 rows per tile (bounded waste).
    tile_n = max(128, _round_up(_cdiv(N, n_par * tiles_per_par), 128))
    n_padded = tile_n * n_par * tiles_per_par

    est_bytes = fixed + per_lane * tile_n
    vmem_limit = int(max(est_bytes + (4 << 20), 24 << 20))

    return dict(N=N, D=D, d_pad=d_pad, tile_n=tile_n, n_par=n_par,
                tiles_per_par=tiles_per_par, n_padded=n_padded,
                n_pad=n_padded - N, vmem_limit=vmem_limit)


def _glm_poisson_kernel(x_ref, w_ref, c_ref, out_ref, acc_ref):
    # x_ref  : (d_pad, TN) bf16 — rows of x on the lane axis (lane-dense)
    # w_ref  : (d_pad, 1)  f32  — weight column (resident, tiny)
    # c_ref  : (1, TN)     f32  — counts, lane-dense
    # out_ref: (1, TN)     f32  — per-lane partial-sum accumulator, resident across
    #                             the inner ("arbitrary") grid axis
    # acc_ref: (16, TN)    f32  — scratch accumulator for the D reduction
    i = pl.program_id(1)

    @pl.when(i == 0)
    def _():
        out_ref[...] = jnp.zeros_like(out_ref)

    d_pad = x_ref.shape[0]
    n_chunks = d_pad // 16

    # Walk D in 16-sublane chunks (VPU multiply-accumulate in f32); never materialize
    # a full (D, TN) f32 temporary.
    acc_ref[...] = x_ref[pl.ds(0, 16), :].astype(jnp.float32) * w_ref[pl.ds(0, 16), :]
    if n_chunks > 1:
        if n_chunks <= 8:          # typical GLM: few covariates -> static unroll
            for k in range(1, n_chunks):
                s = k * 16
                acc_ref[...] += (x_ref[pl.ds(s, 16), :].astype(jnp.float32)
                                 * w_ref[pl.ds(s, 16), :])
        else:
            @pl.loop(1, n_chunks)
            def _(k):
                s = pl.multiple_of(k * 16, 16)
                acc_ref[...] += (x_ref[pl.ds(s, 16), :].astype(jnp.float32)
                                 * w_ref[pl.ds(s, 16), :])

    log_mu = jnp.sum(acc_ref[...], axis=0, keepdims=True)   # (1, TN), single XLU reduce
    mu = jnp.exp(log_mu)                                     # lane-dense EUP work
    # Poisson log pmf minus the weight-independent lgamma(c+1) term (added outside).
    out_ref[...] += c_ref[...] * log_mu - mu


def glm_poisson_prepare(x, c, *, num_parallel=1, vmem_budget_bytes=None):
    """One-time layout + constant hoisting. Call once; reuse across weight updates."""
    x = jnp.asarray(x, jnp.float32)
    N, D = x.shape
    c_flat = jnp.reshape(jnp.asarray(c, jnp.float32), (-1,))
    meta = _choose_tiling(N, D, num_parallel, vmem_budget_bytes)
    n_pad = meta["n_pad"]
    d_extra = meta["d_pad"] - D
    # Layout plumbing done ONCE (amortized): rows -> lane axis, bf16 HBM stream.
    x_l = jnp.pad(x, ((0, n_pad), (0, d_extra))).T.astype(jnp.bfloat16)  # (d_pad, n_padded)
    c_row = jnp.pad(c_flat, (0, n_pad)).reshape(1, meta["n_padded"])
    # Weight-independent Poisson normalizer, hoisted out of kernel and update loop.
    mean_lgamma = jnp.mean(jax.lax.lgamma(c_flat + 1.0))
    return x_l, c_row, mean_lgamma, meta


def glm_poisson_objective(x_l, c_row, mean_lgamma, weight, meta):
    """Objective -mean(Poisson(exp(x@W.T)).log_prob(c)) from prepared inputs."""
    d_pad, n_padded = x_l.shape
    D = meta["D"]
    tile_n, n_par, tiles = meta["tile_n"], meta["n_par"], meta["tiles_per_par"]

    w_col = jnp.pad(jnp.reshape(jnp.asarray(weight, jnp.float32), (D, 1)),
                    ((0, d_pad - D), (0, 0)))

    cost = pl.CostEstimate(
        flops=2 * n_padded * d_pad + 3 * n_padded,
        transcendentals=n_padded,
        bytes_accessed=(n_padded * d_pad * 2 + n_padded * 4 + d_pad * 4
                        + n_par * tile_n * 4))

    out = pl.pallas_call(
        _glm_poisson_kernel,
        out_shape=jax.ShapeDtypeStruct((n_par, 1, tile_n), jnp.float32),
        grid_spec=pltpu.PrefetchScalarGridSpec(
            num_scalar_prefetch=0,
            grid=(n_par, tiles),
            in_specs=[
                # x transposed: (d_pad, tile_n) column block per step, bf16
                pl.BlockSpec((d_pad, tile_n), lambda p, i, t=tiles: (0, p * t + i)),
                # weight column, resident (constant block index)
                pl.BlockSpec((d_pad, 1), lambda p, i: (0, 0)),
                # counts, lane-dense row block
                pl.BlockSpec((1, tile_n), lambda p, i, t=tiles: (0, p * t + i)),
            ],
            # Output block constant across the inner axis -> resident accumulator.
            out_specs=pl.BlockSpec((None, 1, tile_n), lambda p, i: (p, 0, 0)),
            scratch_shapes=[pltpu.VMEM((16, tile_n), jnp.float32)],
        ),
        compiler_params=pltpu.CompilerParams(
            dimension_semantics=("parallel", "arbitrary"),
            vmem_limit_bytes=meta["vmem_limit"]),
        cost_estimate=cost,
    )(x_l, w_col, c_row)

    # Every padded row has x == 0 and c == 0 exactly (exact in bf16 too), so each
    # contributes c*log_mu - mu = 0 - exp(0) = -1; correct the padded sum exactly.
    sum_log_prob_partial = jnp.sum(out) + jnp.float32(meta["n_pad"])
    return -(sum_log_prob_partial / jnp.float32(meta["N"])) + mean_lgamma


def glm_poisson_obj(x, weight, c, **kwargs):
    """Convenience one-shot wrapper (for repeated evaluations, call prepare once)."""
    x_l, c_row, mean_lgamma, meta = glm_poisson_prepare(x, c, **kwargs)
    return glm_poisson_objective(x_l, c_row, mean_lgamma, weight, meta)


def glm_poisson_ref(x, weight, c):
    log_mu = x @ weight.T
    mu = jnp.exp(log_mu)
    log_prob = c * log_mu - mu - jax.lax.lgamma(c + 1.0)
    return -jnp.mean(log_prob)


if __name__ == "__main__":
    N, D = 128, 32  # batch of 128 observations, in_dim = 32

    key = jax.random.PRNGKey(0)
    kx, kw, kc = jax.random.split(key, 3)

    x = jax.random.normal(kx, (N, D), dtype=jnp.float32)
    # torch.nn.init.uniform_(weight, a=-0.01, b=0.01), weight shape (1, in_dim)
    weight = jax.random.uniform(kw, (1, D), dtype=jnp.float32,
                                minval=-0.01, maxval=0.01)
    # Poisson-count observations as float32 (matching torch tensor semantics)
    c = jax.random.poisson(kc, lam=1.5, shape=(N, 1)).astype(jnp.float32)

    # Prepare once (amortized across GLM weight updates), then evaluate the objective.
    x_l, c_row, mean_lgamma, meta = glm_poisson_prepare(x, c)
    obj = glm_poisson_objective(x_l, c_row, mean_lgamma, weight, meta)
    obj = jax.block_until_ready(obj)

    # Exact (up to f32 accumulation order) vs. a reference fed the bf16-rounded x.
    ref_bf16_in = glm_poisson_ref(x.astype(jnp.bfloat16).astype(jnp.float32), weight, c)
    assert jnp.allclose(obj, ref_bf16_in, rtol=1e-5, atol=1e-5), (obj, ref_bf16_in)
    # Close to the full-f32 reference (bf16 x-stream rounding, ~1e-3 relative).
    ref_f32 = glm_poisson_ref(x, weight, c)
    assert jnp.allclose(obj, ref_f32, rtol=3e-3, atol=3e-3), (obj, ref_f32)

    print("KERNEL_OK")
</pallas_src>

<mosaic_0001>
module attributes {stable_mosaic.version = 11 : i64} {
  func.func @_glm_poisson_kernel(%arg0: i32, %arg1: i32, %arg2: memref<32x128xbf16, #tpu.memory_space<vmem>>, %arg3: memref<32x1xf32, #tpu.memory_space<vmem>>, %arg4: memref<1x128xf32, #tpu.memory_space<vmem>>, %arg5: memref<1x1x128xf32, #tpu.memory_space<vmem>>, %arg6: memref<16x128xf32, #tpu.memory_space<vmem>>) attributes {dimension_semantics = [#tpu.dimension_semantics<parallel>, #tpu.dimension_semantics<arbitrary>], iteration_bounds = array<i64: 1, 1>, scalar_prefetch = 0 : i64, scratch_operands = 1 : i64, tpu.core_type = #tpu.core_type<tc>, window_params = [{transform_indices = @transform_0, window_bounds = array<i64: 32, 128>}, {pipeline_mode = #tpu.pipeline_mode<synchronous>, transform_indices = @transform_1, window_bounds = array<i64: 32, 1>}, {transform_indices = @transform_2, window_bounds = array<i64: 1, 128>}, {transform_indices = @transform_3, window_bounds = array<i64: 1, 1, 128>}]} {
    %c0_i32 = arith.constant 0 : i32
    %0 = arith.cmpi eq, %arg1, %c0_i32 : i32
    %1 = arith.extui %0 : i1 to i32
    %c0_i32_0 = arith.constant 0 : i32
    %2 = arith.cmpi ne, %1, %c0_i32_0 : i32
    scf.if %2 {
      %cst_23 = arith.constant 0.000000e+00 : f32
      %30 = vector.broadcast %cst_23 : f32 to vector<1x128xf32>
      %c0_24 = arith.constant 0 : index
      %c0_25 = arith.constant 0 : index
      %c0_26 = arith.constant 0 : index
      %31 = vector.load %arg5[%c0_24, %c0_25, %c0_26] : memref<1x1x128xf32, #tpu.memory_space<vmem>>, vector<1x1x128xf32>
      %32 = vector.shape_cast %31 : vector<1x1x128xf32> to vector<1x128xf32>
      %33 = vector.shape_cast %30 : vector<1x128xf32> to vector<1x1x128xf32>
      tpu.vector_store %arg5[%c0_24, %c0_25, %c0_26], %33 {strides = array<i32>} : memref<1x1x128xf32, #tpu.memory_space<vmem>>, vector<1x1x128xf32>,
    } else {
    }
    %c0 = arith.constant 0 : index
    %c0_1 = arith.constant 0 : index
    %3 = vector.load %arg2[%c0, %c0_1] : memref<32x128xbf16, #tpu.memory_space<vmem>>, vector<16x128xbf16>
    %4 = arith.extf %3 : vector<16x128xbf16> to vector<16x128xf32>
    %c0_2 = arith.constant 0 : index
    %c0_3 = arith.constant 0 : index
    %5 = vector.load %arg3[%c0_2, %c0_3] : memref<32x1xf32, #tpu.memory_space<vmem>>, vector<16x1xf32>
    %6 = vector.broadcast %5 : vector<16x1xf32> to vector<16x128xf32>
    %7 = arith.mulf %4, %6 : vector<16x128xf32>
    %c0_4 = arith.constant 0 : index
    %c0_5 = arith.constant 0 : index
    %8 = vector.load %arg6[%c0_4, %c0_5] : memref<16x128xf32, #tpu.memory_space<vmem>>, vector<16x128xf32>
    tpu.vector_store %arg6[%c0_4, %c0_5], %7 {strides = array<i32>} : memref<16x128xf32, #tpu.memory_space<vmem>>, vector<16x128xf32>,
    %c0_6 = arith.constant 0 : index
    %c0_7 = arith.constant 0 : index
    %9 = vector.load %arg6[%c0_6, %c0_7] : memref<16x128xf32, #tpu.memory_space<vmem>>, vector<16x128xf32>
    %c16 = arith.constant 16 : index
    %c0_8 = arith.constant 0 : index
    %10 = vector.load %arg2[%c16, %c0_8] : memref<32x128xbf16, #tpu.memory_space<vmem>>, vector<16x128xbf16>
    %11 = arith.extf %10 : vector<16x128xbf16> to vector<16x128xf32>
    %c16_9 = arith.constant 16 : index
    %c0_10 = arith.constant 0 : index
    %12 = vector.load %arg3[%c16_9, %c0_10] : memref<32x1xf32, #tpu.memory_space<vmem>>, vector<16x1xf32>
    %13 = vector.broadcast %12 : vector<16x1xf32> to vector<16x128xf32>
    %14 = arith.mulf %11, %13 : vector<16x128xf32>
    %15 = arith.addf %9, %14 : vector<16x128xf32>
    %c0_11 = arith.constant 0 : index
    %c0_12 = arith.constant 0 : index
    %16 = vector.load %arg6[%c0_11, %c0_12] : memref<16x128xf32, #tpu.memory_space<vmem>>, vector<16x128xf32>
    tpu.vector_store %arg6[%c0_11, %c0_12], %15 {strides = array<i32>} : memref<16x128xf32, #tpu.memory_space<vmem>>, vector<16x128xf32>,
    %c0_13 = arith.constant 0 : index
    %c0_14 = arith.constant 0 : index
    %17 = vector.load %arg6[%c0_13, %c0_14] : memref<16x128xf32, #tpu.memory_space<vmem>>, vector<16x128xf32>
    %cst = arith.constant dense<0.000000e+00> : vector<128xf32>
    %18 = vector.multi_reduction <add>, %17, %cst [0] : vector<16x128xf32> to vector<128xf32>
    %19 = vector.shape_cast %18 : vector<128xf32> to vector<1x128xf32>
    %20 = math.exp %19 : vector<1x128xf32>
    %c0_15 = arith.constant 0 : index
    %c0_16 = arith.constant 0 : index
    %c0_17 = arith.constant 0 : index
    %21 = vector.load %arg5[%c0_15, %c0_16, %c0_17] : memref<1x1x128xf32, #tpu.memory_space<vmem>>, vector<1x1x128xf32>
    %22 = vector.shape_cast %21 : vector<1x1x128xf32> to vector<1x128xf32>
    %c0_18 = arith.constant 0 : index
    %c0_19 = arith.constant 0 : index
    %23 = vector.load %arg4[%c0_18, %c0_19] : memref<1x128xf32, #tpu.memory_space<vmem>>, vector<1x128xf32>
    %24 = arith.mulf %23, %19 : vector<1x128xf32>
    %25 = arith.subf %24, %20 : vector<1x128xf32>
    %26 = arith.addf %22, %25 : vector<1x128xf32>
    %c0_20 = arith.constant 0 : index
    %c0_21 = arith.constant 0 : index
    %c0_22 = arith.constant 0 : index
    %27 = vector.load %arg5[%c0_20, %c0_21, %c0_22] : memref<1x1x128xf32, #tpu.memory_space<vmem>>, vector<1x1x128xf32>
    %28 = vector.shape_cast %27 : vector<1x1x128xf32> to vector<1x128xf32>
    %29 = vector.shape_cast %26 : vector<1x128xf32> to vector<1x1x128xf32>
    tpu.vector_store %arg5[%c0_20, %c0_21, %c0_22], %29 {strides = array<i32>} : memref<1x1x128xf32, #tpu.memory_space<vmem>>, vector<1x1x128xf32>,
    return
  }
  func.func @transform_0(%arg0: i32, %arg1: i32) -> (i32, i32) {
    %c1_i32 = arith.constant 1 : i32
    %0 = arith.muli %arg0, %c1_i32 : i32
    %1 = arith.addi %0, %arg1 : i32
    %c0_i32 = arith.constant 0 : i32
    %c0_i32_0 = arith.constant 0 : i32
    return %c0_i32, %1 : i32, i32
  }
  func.func @transform_1(%arg0: i32, %arg1: i32) -> (i32, i32) {
    %c0_i32 = arith.constant 0 : i32
    %c0_i32_0 = arith.constant 0 : i32
    %c0_i32_1 = arith.constant 0 : i32
    return %c0_i32, %c0_i32_0 : i32, i32
  }
  func.func @transform_2(%arg0: i32, %arg1: i32) -> (i32, i32) {
    %c1_i32 = arith.constant 1 : i32
    %0 = arith.muli %arg0, %c1_i32 : i32
    %1 = arith.addi %0, %arg1 : i32
    %c0_i32 = arith.constant 0 : i32
    %c0_i32_0 = arith.constant 0 : i32
    return %c0_i32, %1 : i32, i32
  }
  func.func @transform_3(%arg0: i32, %arg1: i32) -> (i32, i32, i32) {
    %c0_i32 = arith.constant 0 : i32
    %c0_i32_0 = arith.constant 0 : i32
    %c0_i32_1 = arith.constant 0 : i32
    return %arg0, %c0_i32, %c0_i32_0 : i32, i32, i32
  }
}

</mosaic_0001>

<bundles_post_ra>
// kernel: tpu_custom_call.1
= control target key start
LH: loop header
LB: loop body
LE: loop exit
PB: predicated region body
PF: predicated region fallthrough
CT: control target
= control target key end

     0   :  { %v175_v2 = vmov 0   ;;  %s231_s0 = inlined_call_operand.vmem [shape: bf16[32,128], index: 0, kind: input, shape index: {}]   ;;  %s232_s1 = inlined_call_operand.vmem [shape: f32[32,1], index: 1, kind: input, shape index: {}]   ;;  %s233_s2 = inlined_call_operand.vmem [shape: f32[1,128], index: 2, kind: input, shape index: {}]   ;;  %s234_s3 = inlined_call_operand.hbm [shape: f32[1,1,128], index: 3, kind: output, shape index: {}]  }
   0x1   :  { %v77_v0 = vld [vmem:[%s232_s1 + $0x10] sm:$0xff]  ;;  %v55_v1 = vld [vmem:[%s232_s1] sm:$0xff]  ;;  %148 = vset.pattern.permute.xlu1 %v175_v2  ;;  %147 = vset.pattern.permute.xlu0 %v175_v2 }
   0x2   :  { %81 = vperm.xlu1 %148, %v77_v0   ;;  %59 = vperm.xlu0 %147, %v55_v1  }
   0x3   :  { %8 = vsyncpa [#allocation4], 0  ;;  %v78_v3 = vld [vmem:[%s232_s1 + $0x18] sm:$0xff]  ;;  %v56_v4 = vld [vmem:[%s232_s1 + $0x8] sm:$0xff]  ;;  %v176_v5 = vmov 0.0   ;;  %s177_s24 = smov [#allocation3]  }
   0x4   :  { %50 = vst [vmem:[#allocation3] sm:$0x1] %v176_v5  ;;  %v143_v6 = vld [vmem:[%s231_s0 + $0x8] sm:$0xff]   ;;  %v136_v7 = vld [vmem:[%s231_s0] sm:$0xff]   ;;  %s118_s25 = sshll.u32 %s177_s24, 4  ;;  %s119_s25 = int_to_ptr.vmem [resolvable:$true] %s118_s25 }
   0x5   :  { %v141_v8 = vunpack.c.l.bf16 %v143_v6  ;;  %v137_v9 = vunpack.c.l.bf16 %v136_v7  ;;  %v142_v12 = vunpack.c.h.bf16 %v143_v6  ;;  %v138_v13 = vunpack.c.h.bf16 %v136_v7  ;;  %v107_v30 = vld [vmem:[%s233_s2] sm:$0x1]  ;;  %s151_s26 = scalar_lea.vmem %s119_s25, 16  ;;  %s155_s27 = scalar_lea.vmem %s119_s25, 32 }
   0x6   :  { %86 = vperm.xlu1 %148, %v78_v3   ;;  %64 = vperm.xlu0 %147, %v56_v4   ;;  %p152_p0 = scmp.ne.s32.totalorder %s119_s25, %s151_s26  ;;  %p156_p1 = scmp.lt.s32.totalorder %s119_s25, %s119_s25 }
   0x7   :  { %p157_p2 = scmp.lt.s32.totalorder %s155_s27, %s151_s26 }
   0x9   :  { %p158_p3 = por %p157_p2, %p156_p1 }
   0xb   :  { %v106_v33 = vld [vmem:[#allocation3] sm:$0x1]  ;;  %p159_p4 = pnand %p158_p3, %p152_p0 }
  0x81   :  { %v82_v10 = vpop.permute.xlu1 %81  ;;  %v60_v11 = vpop.permute.xlu0 %59 }
  0x82   :  { %v89_v14 = vmul.f32 %v141_v8, %v82_v10  ;;  %v67_v15 = vmul.f32 %v137_v9, %v60_v11 }
  0x84   :  { %v91_v20 = vadd.f32 %v89_v14, %v67_v15 }
  0x85   :  { %v87_v16 = vpop.permute.xlu1 %86  ;;  %v65_v17 = vpop.permute.xlu0 %64 }
  0x86   :  { %v90_v18 = vmul.f32 %v142_v12, %v87_v16  ;;  %v68_v19 = vmul.f32 %v138_v13, %v65_v17 }
  0x88   :  { %v92_v21 = vadd.f32 %v90_v18, %v68_v19 }
  0x8a   :  { %v97_v22 = vadd.f32 %v92_v21, %v91_v20 }
  0x8c   :  { %v98_v23 = vrot.slane %v97_v22, 4 }
  0x8e   :  { %v99_v24 = vadd.f32 %v98_v23, %v97_v22 }
  0x90   :  { %v100_v25 = vrot.slane %v99_v24, 2 }
  0x92   :  { %v101_v26 = vadd.f32 %v100_v25, %v99_v24 }
  0x94   :  { %v102_v27 = vrot.slane %v101_v26, 1 }
  0x96   :  { %v103_v28 = vadd.f32 %v102_v27, %v101_v26 }
  0x98   :  { %v104_v29 = vmul.f32 1.442695, %v103_v28  ;;  %v108_v31 = vmul.f32 %v107_v30, %v103_v28 }
  0x9a   :  { %149 = vpow2.f32 %v104_v29 }
  0xa4   :  { %v150_v32 = vpop.eup %149 }
  0xa5   :  { %v109_v34 = vsub.f32 %v108_v31, %v150_v32 }
  0xa7   :  { %v110_v35 = vadd.f32 %v109_v34, %v106_v33 }
  0xa9   :  { %111 = vst [vmem:[#allocation3] sm:$0x1] %v110_v35 }
  0xaa   :  { %162 = shalt.err (!%p159_p4)
}
  0xab   :  { %s163_s2 = scalar_lea.hbm %s234_s3, 16 }
  0xac   :  { %p164_p5 = scmp.ne.s32.totalorder %s234_s3, %s163_s2  ;;  %p167_p6 = scmp.lt.u32.totalorder %s163_s2, %s234_s3 }
  0xae   :  { %p169_p7 = pnand %p167_p6, %p164_p5 }
  0xb0   :  { %172 = shalt.err (!%p169_p7)
}
  0xb1   :  { %121 = dma.vmem_to_hbm [thread:$0]  %s119_s25, 16, %s234_s3, [#allocation4]  }
  0xb2   :  { %173 = dma.done.wait [#allocation4], 16  }
  0xb3   :  { %174 = vsyncadd [#allocation4], 4294967280 }
  0xb4   :  { %125 = vsyncpa [#allocation4], 1 }

</bundles_post_ra>
